<compile_context>
chip_gen: v6e
topology: v6e:2x2x1
jax: 0.10.0
libtpu: 0.0.40
codegen_flags: <defaults>
</compile_context>

<pallas_src>
import functools

import jax
import jax.numpy as jnp
from jax import lax
from jax.experimental import pallas as pl
from jax.experimental.pallas import tpu as pltpu

KSIZE = 7
PAD = KSIZE // 2


def _round_up(x, m):
    return (x + m - 1) // m * m


def _sublane_pack(itemsize):
    # vreg sublane packing: 8 rows for 4-byte, 16 for 2-byte, 32 for 1-byte.
    return max(1, 4 // max(1, itemsize)) * 8


def _scoped_vmem_limit():
    """Per-generation scoped-VMEM limit (bytes) with headroom below physical."""
    cap = 64 << 20                        # conservative default (v7x physical)
    try:
        cap = int(getattr(pltpu.get_tpu_info(), "vmem_capacity_bytes", cap))
    except Exception:
        pass
    # v5e/v6e (128 MiB) -> 96 MiB scoped; v7x (64 MiB) -> 48 MiB scoped.
    return min(cap, max(32 << 20, min(cap * 3 // 4, cap - (16 << 20))))


def _choose_hw_tile(B, HW, itemsize, block_budget):
    """Lane-aligned spatial tile: full row unless (a) B == 1 and we can split to
    feed both v7x TensorCores, or (b) a minimal-channel block would not fit."""
    if HW % 128 != 0:
        return HW                         # BlockSpec requires the full last dim
    groups = HW // 128
    sub = _sublane_pack(itemsize)
    want = 2 if (B == 1 and groups >= 2) else 1
    for n in range(1, groups + 1):
        if groups % n:
            continue
        tile = HW // n
        if n >= want and sub * tile * itemsize <= block_budget:
            return tile
    return 128


def _choose_c_tile(C, hw_tile, itemsize, block_budget):
    """Largest channel block (multiple of 8, or all of C) whose PHYSICAL padded
    size (sublane + lane padding) fits the budget. -> (c_tile, needs_tail_mask)."""
    sub = _sublane_pack(itemsize)
    row_bytes = _round_up(hw_tile, 128) * itemsize
    max_rows = max(sub, (block_budget // row_bytes) // sub * sub)
    if C <= max_rows:
        return C, False                   # whole channel dim in one block
    # Prefer a multiple-of-8 divisor of C (full tiles, no masking needed).
    start = max_rows - max_rows % 8
    for cand in range(start, max_rows // 2, -8):
        if cand > 0 and C % cand == 0:
            return cand, False
    cand = max(8, start)
    return cand, (C % cand != 0)


def _reduce_kernel(x_ref, o_ref, max_sc, sum_sc, *, inv_c, c_total, c_tile,
                   mask_tail):
    # x_ref  : VMEM (c_tile, hw_tile) native dtype (one channel chunk)
    # o_ref  : VMEM (2, hw_tile) f32 -- row 0: channel max, row 1: channel mean
    # scratch: (1, hw_tile) f32 running max / running sum
    c_step = pl.program_id(2)

    @pl.when(c_step == 0)
    def _init():
        max_sc[...] = jnp.full(max_sc.shape, -jnp.inf, dtype=jnp.float32)
        sum_sc[...] = jnp.zeros(sum_sc.shape, dtype=jnp.float32)

    x = x_ref[...]
    if mask_tail:
        # Last channel chunk may read past C: mask invalid rows.
        ch = c_step * c_tile + lax.broadcasted_iota(jnp.int32, (c_tile, 1), 0)
        valid = ch < c_total
        if jnp.issubdtype(x.dtype, jnp.floating):
            neg_fill = jnp.full((), -jnp.inf, dtype=x.dtype)
        else:
            neg_fill = jnp.full((), jnp.iinfo(x.dtype).min, dtype=x.dtype)
        x_max = jnp.where(valid, x, neg_fill)
        x_sum = jnp.where(valid, x, jnp.zeros((), dtype=x.dtype))
    else:
        x_max = x
        x_sum = x

    # max is exact in the native dtype; only the sum accumulates in f32.
    max_sc[...] = jnp.maximum(
        max_sc[...],
        jnp.max(x_max, axis=0, keepdims=True).astype(jnp.float32))
    sum_sc[...] = sum_sc[...] + jnp.sum(
        x_sum.astype(jnp.float32), axis=0, keepdims=True)

    @pl.when(c_step == pl.num_programs(2) - 1)
    def _finalize():
        # channel order matches torch.cat([max, avg], dim=1)
        o_ref[0:1, :] = max_sc[...]
        o_ref[1:2, :] = sum_sc[...] * inv_c


def _conv_kernel(bias_ref, bands_ref, f_ref, o_ref):
    # bias_ref : SMEM (1,) f32
    # bands_ref: VMEM (KSIZE, 2W, W) f32 banded Toeplitz column matrices
    # f_ref    : VMEM (H, 2W) f32 -- [:, :W] = channel max, [:, W:] = channel mean
    # o_ref    : VMEM (H, W) x.dtype
    H, W2 = f_ref.shape
    W = W2 // 2
    feat = f_ref[...]
    rows = lax.broadcasted_iota(jnp.int32, (H, 1), 0)
    acc = jnp.zeros((H, W), dtype=jnp.float32)
    for kh in range(KSIZE):
        dr = kh - PAD
        row_ok = (rows + dr >= 0) & (rows + dr < H)           # (H, 1), 7 total
        # shifted[i, :] = feat[i + dr, :]; rows outside [0, H) zeroed (SAME pad)
        shifted = pltpu.roll(feat, shift=(-dr) % H, axis=0)
        shifted = jnp.where(row_ok, shifted, 0.0)
        # all 7 column taps AND both input channels in one MXU matmul
        acc = acc + jnp.dot(shifted, bands_ref[kh],
                            preferred_element_type=jnp.float32)
    o_ref[...] = jax.nn.sigmoid(acc + bias_ref[0]).astype(o_ref.dtype)


@jax.jit
def spatial_attention(x, weight, bias):
    """x: (B, C, H, W); weight: (1, 2, 7, 7); bias: (1,) -> (B, 1, H, W) x.dtype."""
    B, C, H, W = x.shape
    HW = H * W
    itemsize = x.dtype.itemsize

    # ---- padding-aware physical-VMEM planning (per TPU generation) ----
    scoped = _scoped_vmem_limit()
    # 2 pipeline buffers for the x stream + ~6 MiB for out/scratch/headroom.
    block_budget = min(8 << 20, max(512 << 10, (scoped - (6 << 20)) // 2))
    hw_tile = _choose_hw_tile(B, HW, itemsize, block_budget)
    c_tile, mask_tail = _choose_c_tile(C, hw_tile, itemsize, block_budget)
    n_hw = HW // hw_tile
    n_c = pl.cdiv(C, c_tile)

    # ---- kernel 1: lane-dense streaming channel max / mean ----
    x_flat = x.reshape(B, C, HW)                      # contiguous: free reshape
    reduce_kernel = functools.partial(
        _reduce_kernel, inv_c=1.0 / C, c_total=C, c_tile=c_tile,
        mask_tail=mask_tail)
    stats = pl.pallas_call(
        reduce_kernel,
        out_shape=jax.ShapeDtypeStruct((B, 2, HW), jnp.float32),
        grid=(B, n_hw, n_c),
        in_specs=[pl.BlockSpec((None, c_tile, hw_tile),
                               lambda b, s, c: (b, c, s))],
        out_specs=pl.BlockSpec((None, 2, hw_tile), lambda b, s, c: (b, 0, s)),
        scratch_shapes=[pltpu.VMEM((1, hw_tile), jnp.float32),   # running max
                        pltpu.VMEM((1, hw_tile), jnp.float32)],  # running sum
        compiler_params=pltpu.CompilerParams(
            dimension_semantics=("parallel", "parallel", "arbitrary"),
            vmem_limit_bytes=scoped),
    )(x_flat)

    # ---- kernel 2: 7x7 (2 -> 1 ch) conv as banded-Toeplitz MXU matmuls ----
    # cat[b, i, c*W + j] = stats[b, c, i*W + j]  (max in cols [0,W), avg in [W,2W))
    cat = stats.reshape(B, 2, H, W).transpose(0, 2, 1, 3).reshape(B, H, 2 * W)

    # bands[kh, c*W + j', j] = weight[0, c, kh, j' - j + PAD] (zero outside band)
    w = weight.reshape(2, KSIZE, KSIZE).astype(jnp.float32)
    jj = jnp.arange(W)
    kw_idx = jj[:, None] - jj[None, :] + PAD                  # (W, W): j' - j + PAD
    in_band = (kw_idx >= 0) & (kw_idx < KSIZE)
    kw_safe = jnp.clip(kw_idx, 0, KSIZE - 1)
    bands = jnp.where(in_band[None, None], w[:, :, kw_safe], 0.0)   # (2, K, W, W)
    bands = bands.transpose(1, 0, 2, 3).reshape(KSIZE, 2 * W, W)
    # TODO(synk): for W >= 256 tile the output columns and materialize only a
    # (W_tile + 6)-wide band slab instead of the dense (2W, W) Toeplitz.

    bias_arr = bias.reshape(1).astype(jnp.float32)
    out = pl.pallas_call(
        _conv_kernel,
        out_shape=jax.ShapeDtypeStruct((B, H, W), x.dtype),
        grid=(B,),
        in_specs=[
            pl.BlockSpec(memory_space=pltpu.MemorySpace.SMEM),       # bias
            pl.BlockSpec((KSIZE, 2 * W, W), lambda b: (0, 0, 0)),    # bands (resident)
            pl.BlockSpec((None, H, 2 * W), lambda b: (b, 0, 0)),     # cat features
        ],
        out_specs=pl.BlockSpec((None, H, W), lambda b: (b, 0, 0)),
        compiler_params=pltpu.CompilerParams(
            dimension_semantics=("parallel",),
            vmem_limit_bytes=scoped),
    )(bias_arr, bands, cat)

    # NCHW with a single attention channel, matching the PyTorch module.
    return out.reshape(B, 1, H, W)


def reference(x, weight, bias):
    """Pure-JAX reference matching the PyTorch forward."""
    xf = x.astype(jnp.float32)
    mx = jnp.max(xf, axis=1, keepdims=True)
    av = jnp.mean(xf, axis=1, keepdims=True)
    r = jnp.concatenate([mx, av], axis=1)
    out = lax.conv_general_dilated(
        r, weight.astype(jnp.float32),
        window_strides=(1, 1),
        padding=[(PAD, PAD), (PAD, PAD)],
        dimension_numbers=("NCHW", "OIHW", "NCHW"),
        precision=lax.Precision.HIGHEST,
    )
    return jax.nn.sigmoid(out + bias.reshape(1, -1, 1, 1))


if __name__ == "__main__":
    key = jax.random.PRNGKey(0)
    kx, kw, kb = jax.random.split(key, 3)

    B, C, H, W = 2, 4, 16, 16
    x = jax.random.normal(kx, (B, C, H, W), dtype=jnp.float32)
    # nn.Conv2d(2, 1, 7, padding=3)-shaped synthetic parameters.
    weight = 0.1 * jax.random.normal(kw, (1, 2, KSIZE, KSIZE), dtype=jnp.float32)
    bias = 0.05 * jax.random.normal(kb, (1,), dtype=jnp.float32)

    out = spatial_attention(x, weight, bias)
    out = jax.block_until_ready(out)

    ref = reference(x, weight, bias)
    assert out.shape == (B, 1, H, W), out.shape
    assert jnp.allclose(out.astype(jnp.float32), ref, atol=2e-3, rtol=2e-3), \
        f"max abs err {jnp.max(jnp.abs(out.astype(jnp.float32) - ref))}"

    print("KERNEL_OK")
</pallas_src>

<mosaic_0001>
module attributes {stable_mosaic.version = 11 : i64} {
  func.func @_reduce_kernel(%arg0: i32, %arg1: i32, %arg2: i32, %arg3: memref<1x4x256xf32, #tpu.memory_space<vmem>>, %arg4: memref<1x2x256xf32, #tpu.memory_space<vmem>>, %arg5: memref<1x256xf32, #tpu.memory_space<vmem>>, %arg6: memref<1x256xf32, #tpu.memory_space<vmem>>) attributes {dimension_semantics = [#tpu.dimension_semantics<parallel>, #tpu.dimension_semantics<parallel>, #tpu.dimension_semantics<arbitrary>], iteration_bounds = array<i64: 2, 1, 1>, scalar_prefetch = 0 : i64, scratch_operands = 2 : i64, tpu.core_type = #tpu.core_type<tc>, window_params = [{transform_indices = @transform_0, window_bounds = array<i64: 1, 4, 256>}, {transform_indices = @transform_1, window_bounds = array<i64: 1, 2, 256>}]} {
    %c0_i32 = arith.constant 0 : i32
    %0 = arith.cmpi eq, %arg2, %c0_i32 : i32
    %1 = arith.extui %0 : i1 to i32
    %c0_i32_0 = arith.constant 0 : i32
    %2 = arith.cmpi ne, %1, %c0_i32_0 : i32
    scf.if %2 {
      %cst_14 = arith.constant 0xFF800000 : f32
      %18 = vector.broadcast %cst_14 : f32 to vector<1x256xf32>
      %c0_15 = arith.constant 0 : index
      %c0_16 = arith.constant 0 : index
      %19 = vector.load %arg5[%c0_15, %c0_16] : memref<1x256xf32, #tpu.memory_space<vmem>>, vector<1x256xf32>
      tpu.vector_store %arg5[%c0_15, %c0_16], %18 {strides = array<i32>} : memref<1x256xf32, #tpu.memory_space<vmem>>, vector<1x256xf32>,
      %cst_17 = arith.constant 0.000000e+00 : f32
      %20 = vector.broadcast %cst_17 : f32 to vector<1x256xf32>
      %c0_18 = arith.constant 0 : index
      %c0_19 = arith.constant 0 : index
      %21 = vector.load %arg6[%c0_18, %c0_19] : memref<1x256xf32, #tpu.memory_space<vmem>>, vector<1x256xf32>
      tpu.vector_store %arg6[%c0_18, %c0_19], %20 {strides = array<i32>} : memref<1x256xf32, #tpu.memory_space<vmem>>, vector<1x256xf32>,
    } else {
    }
    %c0 = arith.constant 0 : index
    %c0_1 = arith.constant 0 : index
    %c0_2 = arith.constant 0 : index
    %3 = vector.load %arg3[%c0, %c0_1, %c0_2] : memref<1x4x256xf32, #tpu.memory_space<vmem>>, vector<1x4x256xf32>
    %4 = vector.shape_cast %3 : vector<1x4x256xf32> to vector<4x256xf32>
    %c0_3 = arith.constant 0 : index
    %c0_4 = arith.constant 0 : index
    %5 = vector.load %arg5[%c0_3, %c0_4] : memref<1x256xf32, #tpu.memory_space<vmem>>, vector<1x256xf32>
    %cst = arith.constant dense<0xFF800000> : vector<256xf32>
    %6 = vector.multi_reduction <maximumf>, %4, %cst [0] : vector<4x256xf32> to vector<256xf32>
    %7 = vector.shape_cast %6 : vector<256xf32> to vector<1x256xf32>
    %8 = arith.maximumf %5, %7 : vector<1x256xf32>
    %c0_5 = arith.constant 0 : index
    %c0_6 = arith.constant 0 : index
    %9 = vector.load %arg5[%c0_5, %c0_6] : memref<1x256xf32, #tpu.memory_space<vmem>>, vector<1x256xf32>
    tpu.vector_store %arg5[%c0_5, %c0_6], %8 {strides = array<i32>} : memref<1x256xf32, #tpu.memory_space<vmem>>, vector<1x256xf32>,
    %c0_7 = arith.constant 0 : index
    %c0_8 = arith.constant 0 : index
    %10 = vector.load %arg6[%c0_7, %c0_8] : memref<1x256xf32, #tpu.memory_space<vmem>>, vector<1x256xf32>
    %cst_9 = arith.constant dense<0.000000e+00> : vector<256xf32>
    %11 = vector.multi_reduction <add>, %4, %cst_9 [0] : vector<4x256xf32> to vector<256xf32>
    %12 = vector.shape_cast %11 : vector<256xf32> to vector<1x256xf32>
    %13 = arith.addf %10, %12 : vector<1x256xf32>
    %c0_10 = arith.constant 0 : index
    %c0_11 = arith.constant 0 : index
    %14 = vector.load %arg6[%c0_10, %c0_11] : memref<1x256xf32, #tpu.memory_space<vmem>>, vector<1x256xf32>
    tpu.vector_store %arg6[%c0_10, %c0_11], %13 {strides = array<i32>} : memref<1x256xf32, #tpu.memory_space<vmem>>, vector<1x256xf32>,
    %c0_i32_12 = arith.constant 0 : i32
    %15 = arith.cmpi eq, %arg2, %c0_i32_12 : i32
    %16 = arith.extui %15 : i1 to i32
    %c0_i32_13 = arith.constant 0 : i32
    %17 = arith.cmpi ne, %16, %c0_i32_13 : i32
    scf.if %17 {
      %c0_14 = arith.constant 0 : index
      %c0_15 = arith.constant 0 : index
      %18 = vector.load %arg5[%c0_14, %c0_15] : memref<1x256xf32, #tpu.memory_space<vmem>>, vector<1x256xf32>
      %c0_16 = arith.constant 0 : index
      %c0_17 = arith.constant 0 : index
      %c0_18 = arith.constant 0 : index
      %19 = vector.load %arg4[%c0_16, %c0_17, %c0_18] : memref<1x2x256xf32, #tpu.memory_space<vmem>>, vector<1x1x256xf32>
      %20 = vector.shape_cast %19 : vector<1x1x256xf32> to vector<1x256xf32>
      %21 = vector.shape_cast %18 : vector<1x256xf32> to vector<1x1x256xf32>
      tpu.vector_store %arg4[%c0_16, %c0_17, %c0_18], %21 {strides = array<i32>} : memref<1x2x256xf32, #tpu.memory_space<vmem>>, vector<1x1x256xf32>,
      %c0_19 = arith.constant 0 : index
      %c0_20 = arith.constant 0 : index
      %22 = vector.load %arg6[%c0_19, %c0_20] : memref<1x256xf32, #tpu.memory_space<vmem>>, vector<1x256xf32>
      %cst_21 = arith.constant 2.500000e-01 : f32
      %23 = vector.broadcast %cst_21 : f32 to vector<1x256xf32>
      %24 = arith.mulf %22, %23 : vector<1x256xf32>
      %c0_22 = arith.constant 0 : index
      %c1 = arith.constant 1 : index
      %c0_23 = arith.constant 0 : index
      %25 = vector.load %arg4[%c0_22, %c1, %c0_23] : memref<1x2x256xf32, #tpu.memory_space<vmem>>, vector<1x1x256xf32>
      %26 = vector.shape_cast %25 : vector<1x1x256xf32> to vector<1x256xf32>
      %27 = vector.shape_cast %24 : vector<1x256xf32> to vector<1x1x256xf32>
      tpu.vector_store %arg4[%c0_22, %c1, %c0_23], %27 {strides = array<i32>} : memref<1x2x256xf32, #tpu.memory_space<vmem>>, vector<1x1x256xf32>,
    } else {
    }
    return
  }
  func.func @transform_0(%arg0: i32, %arg1: i32, %arg2: i32) -> (i32, i32, i32) {
    %c0_i32 = arith.constant 0 : i32
    return %arg0, %arg2, %arg1 : i32, i32, i32
  }
  func.func @transform_1(%arg0: i32, %arg1: i32, %arg2: i32) -> (i32, i32, i32) {
    %c0_i32 = arith.constant 0 : i32
    %c0_i32_0 = arith.constant 0 : i32
    return %arg0, %c0_i32, %arg1 : i32, i32, i32
  }
}

module attributes {stable_mosaic.version = 11 : i64} {
  func.func @_conv_kernel(%arg0: i32, %arg1: memref<1xf32, #tpu.memory_space<smem>>, %arg2: memref<7x32x16xf32, #tpu.memory_space<vmem>>, %arg3: memref<1x16x32xf32, #tpu.memory_space<vmem>>, %arg4: memref<1x16x16xf32, #tpu.memory_space<vmem>>) attributes {dimension_semantics = [#tpu.dimension_semantics<parallel>], iteration_bounds = array<i64: 2>, scalar_prefetch = 0 : i64, scratch_operands = 0 : i64, tpu.core_type = #tpu.core_type<tc>, window_params = [{transform_indices = @transform_0, window_bounds = array<i64: 1>}, {pipeline_mode = #tpu.pipeline_mode<synchronous>, transform_indices = @transform_1, window_bounds = array<i64: 7, 32, 16>}, {transform_indices = @transform_2, window_bounds = array<i64: 1, 16, 32>}, {transform_indices = @transform_3, window_bounds = array<i64: 1, 16, 16>}]} {
    %c0 = arith.constant 0 : index
    %c0_0 = arith.constant 0 : index
    %c0_1 = arith.constant 0 : index
    %0 = vector.load %arg3[%c0, %c0_0, %c0_1] : memref<1x16x32xf32, #tpu.memory_space<vmem>>, vector<1x16x32xf32>
    %1 = vector.shape_cast %0 : vector<1x16x32xf32> to vector<16x32xf32>
    %2 = tpu.iota {dimensions = array<i32: 0>} : vector<16x1xi32>
    %cst = arith.constant 0.000000e+00 : f32
    %3 = vector.broadcast %cst : f32 to vector<16x16xf32>
    %c-3_i32 = arith.constant -3 : i32
    %4 = vector.broadcast %c-3_i32 : i32 to vector<16x1xi32>
    %5 = arith.addi %2, %4 : vector<16x1xi32>
    %c0_i32 = arith.constant 0 : i32
    %6 = vector.broadcast %c0_i32 : i32 to vector<16x1xi32>
    %7 = arith.cmpi sge, %5, %6 : vector<16x1xi32>
    %c-3_i32_2 = arith.constant -3 : i32
    %8 = vector.broadcast %c-3_i32_2 : i32 to vector<16x1xi32>
    %9 = arith.addi %2, %8 : vector<16x1xi32>
    %c16_i32 = arith.constant 16 : i32
    %10 = vector.broadcast %c16_i32 : i32 to vector<16x1xi32>
    %11 = arith.cmpi slt, %9, %10 : vector<16x1xi32>
    %12 = arith.andi %7, %11 : vector<16x1xi1>
    %c3_i32 = arith.constant 3 : i32
    %13 = tpu.dynamic_rotate %1 by %c3_i32 dim 0 : vector<16x32xf32>, i32 -> vector<16x32xf32>
    %cst_3 = arith.constant 0.000000e+00 : f32
    %14 = vector.shape_cast %12 : vector<16x1xi1> to vector<16x1xi1>
    %15 = vector.broadcast %14 : vector<16x1xi1> to vector<16x32xi1>
    %16 = vector.broadcast %cst_3 : f32 to vector<16x32xf32>
    %17 = arith.select %15, %13, %16 : vector<16x32xi1>, vector<16x32xf32>
    %c0_4 = arith.constant 0 : index
    %c0_5 = arith.constant 0 : index
    %c0_6 = arith.constant 0 : index
    %18 = vector.load %arg2[%c0_4, %c0_5, %c0_6] : memref<7x32x16xf32, #tpu.memory_space<vmem>>, vector<1x32x16xf32>
    %19 = vector.shape_cast %18 : vector<1x32x16xf32> to vector<32x16xf32>
    %cst_7 = arith.constant dense<0.000000e+00> : vector<16x16xf32>
    %20 = tpu.matmul %17, %19, %cst_7 {dimension_numbers = #tpu.dot_dimension_numbers<[1], [0], [0], [1], [0, 0, 1, 1], [], []>} : vector<16x32xf32>, vector<32x16xf32>, vector<16x16xf32> -> vector<16x16xf32>
    %21 = arith.addf %3, %20 : vector<16x16xf32>
    %c-2_i32 = arith.constant -2 : i32
    %22 = vector.broadcast %c-2_i32 : i32 to vector<16x1xi32>
    %23 = arith.addi %2, %22 : vector<16x1xi32>
    %c0_i32_8 = arith.constant 0 : i32
    %24 = vector.broadcast %c0_i32_8 : i32 to vector<16x1xi32>
    %25 = arith.cmpi sge, %23, %24 : vector<16x1xi32>
    %c-2_i32_9 = arith.constant -2 : i32
    %26 = vector.broadcast %c-2_i32_9 : i32 to vector<16x1xi32>
    %27 = arith.addi %2, %26 : vector<16x1xi32>
    %c16_i32_10 = arith.constant 16 : i32
    %28 = vector.broadcast %c16_i32_10 : i32 to vector<16x1xi32>
    %29 = arith.cmpi slt, %27, %28 : vector<16x1xi32>
    %30 = arith.andi %25, %29 : vector<16x1xi1>
    %c2_i32 = arith.constant 2 : i32
    %31 = tpu.dynamic_rotate %1 by %c2_i32 dim 0 : vector<16x32xf32>, i32 -> vector<16x32xf32>
    %cst_11 = arith.constant 0.000000e+00 : f32
    %32 = vector.shape_cast %30 : vector<16x1xi1> to vector<16x1xi1>
    %33 = vector.broadcast %32 : vector<16x1xi1> to vector<16x32xi1>
    %34 = vector.broadcast %cst_11 : f32 to vector<16x32xf32>
    %35 = arith.select %33, %31, %34 : vector<16x32xi1>, vector<16x32xf32>
    %c1 = arith.constant 1 : index
    %c0_12 = arith.constant 0 : index
    %c0_13 = arith.constant 0 : index
    %36 = vector.load %arg2[%c1, %c0_12, %c0_13] : memref<7x32x16xf32, #tpu.memory_space<vmem>>, vector<1x32x16xf32>
    %37 = vector.shape_cast %36 : vector<1x32x16xf32> to vector<32x16xf32>
    %cst_14 = arith.constant dense<0.000000e+00> : vector<16x16xf32>
    %38 = tpu.matmul %35, %37, %cst_14 {dimension_numbers = #tpu.dot_dimension_numbers<[1], [0], [0], [1], [0, 0, 1, 1], [], []>} : vector<16x32xf32>, vector<32x16xf32>, vector<16x16xf32> -> vector<16x16xf32>
    %39 = arith.addf %21, %38 : vector<16x16xf32>
    %c-1_i32 = arith.constant -1 : i32
    %40 = vector.broadcast %c-1_i32 : i32 to vector<16x1xi32>
    %41 = arith.addi %2, %40 : vector<16x1xi32>
    %c0_i32_15 = arith.constant 0 : i32
    %42 = vector.broadcast %c0_i32_15 : i32 to vector<16x1xi32>
    %43 = arith.cmpi sge, %41, %42 : vector<16x1xi32>
    %c-1_i32_16 = arith.constant -1 : i32
    %44 = vector.broadcast %c-1_i32_16 : i32 to vector<16x1xi32>
    %45 = arith.addi %2, %44 : vector<16x1xi32>
    %c16_i32_17 = arith.constant 16 : i32
    %46 = vector.broadcast %c16_i32_17 : i32 to vector<16x1xi32>
    %47 = arith.cmpi slt, %45, %46 : vector<16x1xi32>
    %48 = arith.andi %43, %47 : vector<16x1xi1>
    %c1_i32 = arith.constant 1 : i32
    %49 = tpu.dynamic_rotate %1 by %c1_i32 dim 0 : vector<16x32xf32>, i32 -> vector<16x32xf32>
    %cst_18 = arith.constant 0.000000e+00 : f32
    %50 = vector.shape_cast %48 : vector<16x1xi1> to vector<16x1xi1>
    %51 = vector.broadcast %50 : vector<16x1xi1> to vector<16x32xi1>
    %52 = vector.broadcast %cst_18 : f32 to vector<16x32xf32>
    %53 = arith.select %51, %49, %52 : vector<16x32xi1>, vector<16x32xf32>
    %c2 = arith.constant 2 : index
    %c0_19 = arith.constant 0 : index
    %c0_20 = arith.constant 0 : index
    %54 = vector.load %arg2[%c2, %c0_19, %c0_20] : memref<7x32x16xf32, #tpu.memory_space<vmem>>, vector<1x32x16xf32>
    %55 = vector.shape_cast %54 : vector<1x32x16xf32> to vector<32x16xf32>
    %cst_21 = arith.constant dense<0.000000e+00> : vector<16x16xf32>
    %56 = tpu.matmul %53, %55, %cst_21 {dimension_numbers = #tpu.dot_dimension_numbers<[1], [0], [0], [1], [0, 0, 1, 1], [], []>} : vector<16x32xf32>, vector<32x16xf32>, vector<16x16xf32> -> vector<16x16xf32>
    %57 = arith.addf %39, %56 : vector<16x16xf32>
    %c0_i32_22 = arith.constant 0 : i32
    %58 = vector.broadcast %c0_i32_22 : i32 to vector<16x1xi32>
    %59 = arith.addi %2, %58 : vector<16x1xi32>
    %c0_i32_23 = arith.constant 0 : i32
    %60 = vector.broadcast %c0_i32_23 : i32 to vector<16x1xi32>
    %61 = arith.cmpi sge, %59, %60 : vector<16x1xi32>
    %c0_i32_24 = arith.constant 0 : i32
    %62 = vector.broadcast %c0_i32_24 : i32 to vector<16x1xi32>
    %63 = arith.addi %2, %62 : vector<16x1xi32>
    %c16_i32_25 = arith.constant 16 : i32
    %64 = vector.broadcast %c16_i32_25 : i32 to vector<16x1xi32>
    %65 = arith.cmpi slt, %63, %64 : vector<16x1xi32>
    %66 = arith.andi %61, %65 : vector<16x1xi1>
    %c0_i32_26 = arith.constant 0 : i32
    %67 = tpu.dynamic_rotate %1 by %c0_i32_26 dim 0 : vector<16x32xf32>, i32 -> vector<16x32xf32>
    %cst_27 = arith.constant 0.000000e+00 : f32
    %68 = vector.shape_cast %66 : vector<16x1xi1> to vector<16x1xi1>
    %69 = vector.broadcast %68 : vector<16x1xi1> to vector<16x32xi1>
    %70 = vector.broadcast %cst_27 : f32 to vector<16x32xf32>
    %71 = arith.select %69, %67, %70 : vector<16x32xi1>, vector<16x32xf32>
    %c3 = arith.constant 3 : index
    %c0_28 = arith.constant 0 : index
    %c0_29 = arith.constant 0 : index
    %72 = vector.load %arg2[%c3, %c0_28, %c0_29] : memref<7x32x16xf32, #tpu.memory_space<vmem>>, vector<1x32x16xf32>
    %73 = vector.shape_cast %72 : vector<1x32x16xf32> to vector<32x16xf32>
    %cst_30 = arith.constant dense<0.000000e+00> : vector<16x16xf32>
    %74 = tpu.matmul %71, %73, %cst_30 {dimension_numbers = #tpu.dot_dimension_numbers<[1], [0], [0], [1], [0, 0, 1, 1], [], []>} : vector<16x32xf32>, vector<32x16xf32>, vector<16x16xf32> -> vector<16x16xf32>
    %75 = arith.addf %57, %74 : vector<16x16xf32>
    %c1_i32_31 = arith.constant 1 : i32
    %76 = vector.broadcast %c1_i32_31 : i32 to vector<16x1xi32>
    %77 = arith.addi %2, %76 : vector<16x1xi32>
    %c0_i32_32 = arith.constant 0 : i32
    %78 = vector.broadcast %c0_i32_32 : i32 to vector<16x1xi32>
    %79 = arith.cmpi sge, %77, %78 : vector<16x1xi32>
    %c1_i32_33 = arith.constant 1 : i32
    %80 = vector.broadcast %c1_i32_33 : i32 to vector<16x1xi32>
    %81 = arith.addi %2, %80 : vector<16x1xi32>
    %c16_i32_34 = arith.constant 16 : i32
    %82 = vector.broadcast %c16_i32_34 : i32 to vector<16x1xi32>
    %83 = arith.cmpi slt, %81, %82 : vector<16x1xi32>
    %84 = arith.andi %79, %83 : vector<16x1xi1>
    %c15_i32 = arith.constant 15 : i32
    %85 = tpu.dynamic_rotate %1 by %c15_i32 dim 0 : vector<16x32xf32>, i32 -> vector<16x32xf32>
    %cst_35 = arith.constant 0.000000e+00 : f32
    %86 = vector.shape_cast %84 : vector<16x1xi1> to vector<16x1xi1>
    %87 = vector.broadcast %86 : vector<16x1xi1> to vector<16x32xi1>
    %88 = vector.broadcast %cst_35 : f32 to vector<16x32xf32>
    %89 = arith.select %87, %85, %88 : vector<16x32xi1>, vector<16x32xf32>
    %c4 = arith.constant 4 : index
    %c0_36 = arith.constant 0 : index
    %c0_37 = arith.constant 0 : index
    %90 = vector.load %arg2[%c4, %c0_36, %c0_37] : memref<7x32x16xf32, #tpu.memory_space<vmem>>, vector<1x32x16xf32>
    %91 = vector.shape_cast %90 : vector<1x32x16xf32> to vector<32x16xf32>
    %cst_38 = arith.constant dense<0.000000e+00> : vector<16x16xf32>
    %92 = tpu.matmul %89, %91, %cst_38 {dimension_numbers = #tpu.dot_dimension_numbers<[1], [0], [0], [1], [0, 0, 1, 1], [], []>} : vector<16x32xf32>, vector<32x16xf32>, vector<16x16xf32> -> vector<16x16xf32>
    %93 = arith.addf %75, %92 : vector<16x16xf32>
    %c2_i32_39 = arith.constant 2 : i32
    %94 = vector.broadcast %c2_i32_39 : i32 to vector<16x1xi32>
    %95 = arith.addi %2, %94 : vector<16x1xi32>
    %c0_i32_40 = arith.constant 0 : i32
    %96 = vector.broadcast %c0_i32_40 : i32 to vector<16x1xi32>
    %97 = arith.cmpi sge, %95, %96 : vector<16x1xi32>
    %c2_i32_41 = arith.constant 2 : i32
    %98 = vector.broadcast %c2_i32_41 : i32 to vector<16x1xi32>
    %99 = arith.addi %2, %98 : vector<16x1xi32>
    %c16_i32_42 = arith.constant 16 : i32
    %100 = vector.broadcast %c16_i32_42 : i32 to vector<16x1xi32>
    %101 = arith.cmpi slt, %99, %100 : vector<16x1xi32>
    %102 = arith.andi %97, %101 : vector<16x1xi1>
    %c14_i32 = arith.constant 14 : i32
    %103 = tpu.dynamic_rotate %1 by %c14_i32 dim 0 : vector<16x32xf32>, i32 -> vector<16x32xf32>
    %cst_43 = arith.constant 0.000000e+00 : f32
    %104 = vector.shape_cast %102 : vector<16x1xi1> to vector<16x1xi1>
    %105 = vector.broadcast %104 : vector<16x1xi1> to vector<16x32xi1>
    %106 = vector.broadcast %cst_43 : f32 to vector<16x32xf32>
    %107 = arith.select %105, %103, %106 : vector<16x32xi1>, vector<16x32xf32>
    %c5 = arith.constant 5 : index
    %c0_44 = arith.constant 0 : index
    %c0_45 = arith.constant 0 : index
    %108 = vector.load %arg2[%c5, %c0_44, %c0_45] : memref<7x32x16xf32, #tpu.memory_space<vmem>>, vector<1x32x16xf32>
    %109 = vector.shape_cast %108 : vector<1x32x16xf32> to vector<32x16xf32>
    %cst_46 = arith.constant dense<0.000000e+00> : vector<16x16xf32>
    %110 = tpu.matmul %107, %109, %cst_46 {dimension_numbers = #tpu.dot_dimension_numbers<[1], [0], [0], [1], [0, 0, 1, 1], [], []>} : vector<16x32xf32>, vector<32x16xf32>, vector<16x16xf32> -> vector<16x16xf32>
    %111 = arith.addf %93, %110 : vector<16x16xf32>
    %c3_i32_47 = arith.constant 3 : i32
    %112 = vector.broadcast %c3_i32_47 : i32 to vector<16x1xi32>
    %113 = arith.addi %2, %112 : vector<16x1xi32>
    %c0_i32_48 = arith.constant 0 : i32
    %114 = vector.broadcast %c0_i32_48 : i32 to vector<16x1xi32>
    %115 = arith.cmpi sge, %113, %114 : vector<16x1xi32>
    %c3_i32_49 = arith.constant 3 : i32
    %116 = vector.broadcast %c3_i32_49 : i32 to vector<16x1xi32>
    %117 = arith.addi %2, %116 : vector<16x1xi32>
    %c16_i32_50 = arith.constant 16 : i32
    %118 = vector.broadcast %c16_i32_50 : i32 to vector<16x1xi32>
    %119 = arith.cmpi slt, %117, %118 : vector<16x1xi32>
    %120 = arith.andi %115, %119 : vector<16x1xi1>
    %c13_i32 = arith.constant 13 : i32
    %121 = tpu.dynamic_rotate %1 by %c13_i32 dim 0 : vector<16x32xf32>, i32 -> vector<16x32xf32>
    %cst_51 = arith.constant 0.000000e+00 : f32
    %122 = vector.shape_cast %120 : vector<16x1xi1> to vector<16x1xi1>
    %123 = vector.broadcast %122 : vector<16x1xi1> to vector<16x32xi1>
    %124 = vector.broadcast %cst_51 : f32 to vector<16x32xf32>
    %125 = arith.select %123, %121, %124 : vector<16x32xi1>, vector<16x32xf32>
    %c6 = arith.constant 6 : index
    %c0_52 = arith.constant 0 : index
    %c0_53 = arith.constant 0 : index
    %126 = vector.load %arg2[%c6, %c0_52, %c0_53] : memref<7x32x16xf32, #tpu.memory_space<vmem>>, vector<1x32x16xf32>
    %127 = vector.shape_cast %126 : vector<1x32x16xf32> to vector<32x16xf32>
    %cst_54 = arith.constant dense<0.000000e+00> : vector<16x16xf32>
    %128 = tpu.matmul %125, %127, %cst_54 {dimension_numbers = #tpu.dot_dimension_numbers<[1], [0], [0], [1], [0, 0, 1, 1], [], []>} : vector<16x32xf32>, vector<32x16xf32>, vector<16x16xf32> -> vector<16x16xf32>
    %129 = arith.addf %111, %128 : vector<16x16xf32>
    %c0_55 = arith.constant 0 : index
    %130 = memref.load %arg1[%c0_55] : memref<1xf32, #tpu.memory_space<smem>>
    %131 = vector.broadcast %130 : f32 to vector<16x16xf32>
    %132 = arith.addf %129, %131 : vector<16x16xf32>
    %133 = arith.negf %132 : vector<16x16xf32>
    %134 = math.exp %133 : vector<16x16xf32>
    %cst_56 = arith.constant 1.000000e+00 : f32
    %135 = vector.broadcast %cst_56 : f32 to vector<16x16xf32>
    %136 = arith.addf %135, %134 : vector<16x16xf32>
    %137 = arith.divf %135, %136 : vector<16x16xf32>
    %c0_57 = arith.constant 0 : index
    %c0_58 = arith.constant 0 : index
    %c0_59 = arith.constant 0 : index
    %138 = vector.load %arg4[%c0_57, %c0_58, %c0_59] : memref<1x16x16xf32, #tpu.memory_space<vmem>>, vector<1x16x16xf32>
    %139 = vector.shape_cast %138 : vector<1x16x16xf32> to vector<16x16xf32>
    %140 = vector.shape_cast %137 : vector<16x16xf32> to vector<1x16x16xf32>
    tpu.vector_store %arg4[%c0_57, %c0_58, %c0_59], %140 {strides = array<i32>} : memref<1x16x16xf32, #tpu.memory_space<vmem>>, vector<1x16x16xf32>,
    return
  }
  func.func @transform_0(%arg0: i32) -> i32 {
    %c0_i32 = arith.constant 0 : i32
    %c0_i32_0 = arith.constant 0 : i32
    return %c0_i32 : i32
  }
  func.func @transform_1(%arg0: i32) -> (i32, i32, i32) {
    %c0_i32 = arith.constant 0 : i32
    %c0_i32_0 = arith.constant 0 : i32
    %c0_i32_1 = arith.constant 0 : i32
    %c0_i32_2 = arith.constant 0 : i32
    return %c0_i32, %c0_i32_0, %c0_i32_1 : i32, i32, i32
  }
  func.func @transform_2(%arg0: i32) -> (i32, i32, i32) {
    %c0_i32 = arith.constant 0 : i32
    %c0_i32_0 = arith.constant 0 : i32
    %c0_i32_1 = arith.constant 0 : i32
    return %arg0, %c0_i32, %c0_i32_0 : i32, i32, i32
  }
  func.func @transform_3(%arg0: i32) -> (i32, i32, i32) {
    %c0_i32 = arith.constant 0 : i32
    %c0_i32_0 = arith.constant 0 : i32
    %c0_i32_1 = arith.constant 0 : i32
    return %arg0, %c0_i32, %c0_i32_0 : i32, i32, i32
  }
}

</mosaic_0001>

<bundles_post_ra>
// kernel: spatial_attention.2
= control target key start
LH: loop header
LB: loop body
LE: loop exit
PB: predicated region body
PF: predicated region fallthrough
CT: control target
= control target key end

     0   :  { %s450_s6 = smov 0   ;;  %s452_s7 = smov 0   ;;  %s503_s0 = inlined_call_operand.vmem [shape: f32[2,4,256], index: 0, kind: input, shape index: {}]   ;;  %s504_s1 = inlined_call_operand.vmem [shape: f32[2,2,256], index: 1, kind: output, shape index: {}]  }
   0x1   :  { %s454_s8 = smov 0  }
   0x2 LB: > { %s30_s9 = sadd.s32 1, %s431_s7  ;;  %p375_p0 = scmp.ge.s32.totalorder %s435_s8, 1  ;;  %s435_s8 = sphi %s454_s8, %s11_s8   ;;  %s431_s7 = sphi %s452_s7, %s508_s7   ;;  %s427_s6 = sphi %s450_s6, %s507_s6  }
   0x3   : > { %p32_p1 = scmp.ge.s32.totalorder %s30_s9, 2  ;;  %p121_p2 = scmp.lt.s32.totalorder %s435_s8, 3 }
   0x5   : > { %s510_s9 = smov (%p32_p1, %s30_s9), 0  ;;  %p122_p3 = pnand %p375_p0, %p121_p2 }
   0x6   : > { %p154_p4 = scmp.lt.s32.totalorder (!%p122_p3), %s427_s6, 1 }
   0x7   : > { %125 = sbr.rel (%p122_p3) target bundleno = 50 (0x32), region = 24 }
   0xc   : > { %v181_v0 = vlaneseq  ;;  %s512_s6 = smov (!%p154_p4, %s427_s6), 1  ;;  %v437_v2 = vmov 0.0   ;;  %v438_v3 = vmov -inf   ;;  %vm192_vm1 = vcmask 1043456  }
   0xd   : > { %s383_s10 = sshll.u32 %s512_s6, 3  ;;  %v439_v16 = vmov 1966171168   ;;  %s384_s14 = sshll.u32 %s512_s6, 2 }
   0xe   : > { %vm468_vm0 = vcmp.lt.s32.totalorder %v181_v0, 256  ;;  %s165_s13 = scalar_lea.vmem %s503_s0, %s383_s10  ;;  %v211_v17 = vunpack.c.l.s4 %v439_v16  ;;  %v214_v26 = vshrl.u32 %v181_v0, 7  ;;  %s175_s17 = scalar_lea.vmem %s504_s1, %s384_s14 }
   0xf   : > { %186 = vst.msk [vmem:[#allocation3] sm:$0x3] %vm468_vm0, %v437_v2  ;;  %185 = vst.msk [vmem:[#allocation2] sm:$0x3] %vm468_vm0, %v438_v3  ;;  %v187_v4 = vld [vmem:[%s165_s13] sm:$0xff] }
  0x10   : > { %v190_v5 = vcombine.high %v187_v4, %v187_v4  ;;  %v232_v6 = vsel %vm192_vm1, %v187_v4, 0.0  ;;  %v193_v7 = vsel %vm192_vm1, %v187_v4, -inf  ;;  %v212_v27 = vunpack.c.0.s8 %v211_v17 }
  0x11   : > { %v233_v8 = vrot.slane %v232_v6, 4  ;;  %v194_v9 = vrot.slane %v193_v7, 4 }
  0x12   : > { %v239_v10 = vsel %vm192_vm1, %v190_v5, 0.0  ;;  %v200_v11 = vsel %vm192_vm1, %v190_v5, -inf  ;;  %v215_v36 = vsub.s32 %v212_v27, %v214_v26 }
  0x13   : > { %v234_v12 = vadd.f32 %v233_v8, %v232_v6  ;;  %v240_v13 = vrot.slane %v239_v10, 4  ;;  %v195_v14 = vmax.f32 %v193_v7, %v194_v9  ;;  %v201_v15 = vrot.slane %v200_v11, 4 }
  0x15   : > { %v235_v18 = vrot.slane %v234_v12, 2  ;;  %v241_v19 = vadd.f32 %v240_v13, %v239_v10  ;;  %v196_v20 = vrot.slane %v195_v14, 2  ;;  %v202_v21 = vmax.f32 %v200_v11, %v201_v15 }
  0x16   : > { %v231_v43 = vld [vmem:[#allocation3] sm:$0x3]  ;;  %v188_v44 = vld [vmem:[#allocation2] sm:$0x3] }
  0x17   : > { %v236_v22 = vadd.f32 %v235_v18, %v234_v12  ;;  %v242_v23 = vrot.slane %v241_v19, 2  ;;  %v197_v24 = vmax.f32 %v195_v14, %v196_v20  ;;  %v203_v25 = vrot.slane %v202_v21, 2 }
  0x19   : > { %v237_v28 = vrot.slane %v236_v22, 1  ;;  %v243_v29 = vadd.f32 %v242_v23, %v241_v19  ;;  %v198_v30 = vrot.slane %v197_v24, 1  ;;  %v204_v31 = vmax.f32 %v202_v21, %v203_v25 }
  0x1b   : > { %v238_v32 = vadd.f32 %v237_v28, %v236_v22  ;;  %v244_v33 = vrot.slane %v243_v29, 1  ;;  %v199_v34 = vmax.f32 %v197_v24, %v198_v30  ;;  %v205_v35 = vrot.slane %v204_v31, 1 }
  0x1d   : > { %v245_v37 = vadd.f32 %v244_v33, %v243_v29  ;;  %v206_v38 = vmax.f32 %v204_v31, %v205_v35 }
  0x1f   : > { %v248_v39 = vcombine.low %v238_v32, %v245_v37  ;;  %v209_v40 = vcombine.low %v199_v34, %v206_v38 }
  0x21   : > { %v255_v41 = vrot.slane %v248_v39, %v215_v36  ;;  %v216_v42 = vrot.slane %v209_v40, %v215_v36 }
  0x23   : > { %v262_v45 = vrot.slane %v255_v41, %v215_v36  ;;  %v223_v46 = vrot.slane %v216_v42, %v215_v36 }
  0x25   : > { %v264_v47 = vadd.f32 %v262_v45, %v231_v43  ;;  %v225_v48 = vmax.f32 %v188_v44, %v223_v46 }
  0x27   : > { %265 = vst.msk [vmem:[#allocation3] sm:$0x3] %vm468_vm0, %v264_v47  ;;  %230 = vst.msk [vmem:[#allocation2] sm:$0x3] %vm468_vm0, %v225_v48 }
  0x2e   : > { %v269_v49 = vld [vmem:[#allocation2] sm:$0x3]  ;;  %v271_v50 = vld [vmem:[#allocation3] sm:$0x3] }
  0x2f   : > { %270 = vst.msk [vmem:[%s175_s17] ss:$2 sm:$0x3] %vm468_vm0, %v269_v49  ;;  %v272_v51 = vmul.f32 0.25, %v271_v50 }
  0x31   : > { %380 = vst.msk [vmem:[%s175_s17 + $0x1] ss:$2 sm:$0x3] %vm468_vm0, %v272_v51 }
  0x32 PF: > { %s11_s8 = sadd.s32 1, %s435_s8   ;;  %s507_s6 = smov %s431_s7 }
  0x33   : > { %p8_p5 = scmp.ge.s32.totalorder %s11_s8, 4   ;;  %s508_s7 = smov %s510_s9 }
  0x35   :  { %10 = sbr.rel (!%p8_p5) target bundleno = 2 (0x2), region = 63 }

// kernel: spatial_attention.3
= control target key start
LH: loop header
LB: loop body
LE: loop exit
PB: predicated region body
PF: predicated region fallthrough
CT: control target
= control target key end

     0   :  { %s1574_s0 = inlined_call_operand.<no memory space> [shape: f32[1], index: 0, kind: input, shape index: {}]   ;;  %s1575_s1 = inlined_call_operand.vmem [shape: f32[7,32,16], index: 1, kind: input, shape index: {}]   ;;  %s1576_s2 = inlined_call_operand.vmem [shape: f32[2,16,32], index: 2, kind: input, shape index: {}]   ;;  %s1577_s3 = inlined_call_operand.hbm [shape: f32[2,16,16], index: 3, kind: output, shape index: {}]  }
   0x1   :  { %8 = sst [smem:[#allocation2]] %s1574_s0 }
   0x2   :  { %9 = vsyncpa [#allocation4], 0 }
   0x3   :  { %11 = vsyncpa [#allocation4 + $0x1], 0  ;;  %s1318_s14 = smov 0   ;;  %s1320_s15 = smov 0  }
   0x4   :  { %s1322_s16 = smov 0   ;;  %s1324_s17 = smov 0  }
   0x5 LB: > { %s1339_s0 = sadd.s32 4294967295, %s1290_s17   ;;  %s1008_s18 = sadd.s32 4294967294, %s1290_s17   ;;  %s1290_s17 = sphi %s1324_s17, %s1583_s17   ;;  %s1286_s16 = sphi %s1322_s16, %s1582_s16   ;;  %s1282_s15 = sphi %s1320_s15, %s1581_s15   ;;  %s1278_s14 = sphi %s1318_s14, %s1580_s14  }
   0x6   : > { %s1343_s19 = sadd.s32 1, %s1290_s17   ;;  %s92_s20 = sadd.s32 1, %s1286_s16 }
   0x7   : > { %s89_s21 = ssub.s32 %s1290_s17, %s1343_s19  ;;  %p102_p0 = scmp.ne.s32.totalorder %s1286_s16, %s1282_s15 }
   0x8   : > { %p90_p1 = scmp.eq.s32.totalorder %s89_s21, 0  ;;  %p103_p2 = scmp.eq.s32.totalorder %s1339_s0, 1 }
   0x9   : > { %p108_p3 = scmp.ne.s32.totalorder %s1282_s15, %s1278_s14  ;;  %p109_p4 = scmp.eq.s32.totalorder %s1008_s18, 1 }
   0xa   : > { %s1354_s22 = scalar_select %p90_p1, %s1286_s16, %s92_s20  }
   0xb   : > { %p1356_p5 = por %p103_p2, %p102_p0  ;;  %p1360_p6 = por %p109_p4, %p108_p3 }
   0xc   : > { %p1011_p7 = scmp.ge.s32.totalorder %s1290_s17, 1  ;;  %p141_p8 = scmp.lt.s32.totalorder %s1290_s17, 3 }
   0xe   : > { %p142_p9 = pnand %p1011_p7, %p141_p8 }
   0xf   : > { %p165_p10 = scmp.lt.s32.totalorder (!%p142_p9), %s1339_s0, 1  ;;  %s913_s29 = sld [smem:[#allocation2]] (!%p142_p9) }
  0x10   : > { %145 = sbr.rel (%p142_p9) target bundleno = 304 (0x130), region = 32  ;;  %s162_s30 = sand.u32 (!%p142_p9), 1, %s1282_s15  }
  0x11   : > { %s1012_s4 = sshll.u32 (!%p142_p9), %s162_s30, 4  ;;  %s1061_s5 = sshll.u32 (!%p142_p9), %s1339_s0, 8 }
  0x12   : > { %s164_s6 = scalar_lea.vmem (!%p142_p9), [#allocation3], %s1012_s4  ;;  %s1534_s11 = scalar_lea.sflag (!%p142_p9), [#allocation4], %s162_s30 }
  0x13   : > { %s946_s7 = sshll.u32 (!%p142_p9), %s164_s6, 4  ;;  %s1292_s12 = smov (!%p142_p9), [#allocation3]   ;;  %s1532_s7 = int_to_ptr.vmem [resolvable:$true] %s946_s7 }
  0x14   : > { %s1234_s13 = sshll.u32 (!%p142_p9), %s1292_s12, 4  ;;  %s1235_s13 = int_to_ptr.vmem [resolvable:$false] %s1234_s13 }
  0x15   : > { %v1018_v0 = vld [vmem:[%s1575_s1 + $0x38] sm:$0xff]  ;;  %v1017_v2 = vld [vmem:[%s1575_s1 + $0x30] sm:$0xff]  ;;  %v172_v3 = vlaneseq  ;;  %v1016_v5 = vld [vmem:[%s1575_s1 + $0x28] sm:$0xff]  ;;  %s166_s10 = scalar_select %p165_p10, %s1339_s0, 1  ;;  %vm222_vm4 = vcmask 261120   ;;  %vm929_vm13 = vcmask 130048  }
  0x16   : > { %v197_v1 = vld [vmem:[%s1575_s1 + $0x18] sm:$0xff]  ;;  %1104 = vmatprep.subr.mxu0 %v1018_v0  ;;  %v196_v4 = vld [vmem:[%s1575_s1 + $0x10] sm:$0xff]  ;;  %v195_v6 = vld [vmem:[%s1575_s1 + $0x8] sm:$0xff]  ;;  %s1230_s0 = scalar_lea.vmem %s1532_s7, 256  ;;  %s1236_s18 = scalar_lea.vmem %s1235_s13, 512 }
  0x17   : > { %1115 = vmatprep.subr.mxu1 %v197_v1  ;;  %1105 = vmatpush3.msra.mxu0 %v1018_v0  ;;  %v1386_v7 = vshrl.u32 %v172_v3, 7  ;;  %v1015_v8 = vld [vmem:[%s1575_s1 + $0x20] sm:$0xff]  ;;  %s1060_s20 = sshll.u32 %s166_s10, 4  ;;  %v1026_v12 = vld [vmem:[%s1575_s1 + $0x58] sm:$0xff]  ;;  %v1025_v29 = vld [vmem:[%s1575_s1 + $0x50] sm:$0xff]  ;;  %s1530_s10 = scalar_lea.hbm %s1577_s3, %s1061_s5 }
  0x18   : > { %1116 = vmatpush3.msra.mxu1 %v197_v1  ;;  %1106 = vmatprep.subr.mxu0 %v1017_v2  ;;  %v194_v9 = vld [vmem:[%s1575_s1] sm:$0xff]  ;;  %s169_s26 = scalar_lea.vmem %s1576_s2, %s1060_s20  ;;  %v1032_v20 = vld [vmem:[%s1575_s1 + $0x78] sm:$0xff]  ;;  %v1031_v30 = vld [vmem:[%s1575_s1 + $0x70] sm:$0xff]  ;;  %p1231_p11 = scmp.ne.s32.totalorder %s1532_s7, %s1230_s0 }
  0x19   : > { %1117 = vmatprep.subr.mxu1 %v196_v4  ;;  %1107 = vmatpush3.msra.mxu0 %v1017_v2  ;;  %v198_v10 = vadd.s32 4294967294, %v1386_v7  ;;  %v175_v11 = vadd.s32 4294967293, %v1386_v7  ;;  %vm208_vm0 = vcmp.lt.s32.totalorder %v1386_v7, 2  ;;  %v1403_v13 = vld [vmem:[%s169_s26] sm:$0xff]  ;;  %v1405_v14 = vld [vmem:[%s169_s26 + $0x8] sm:$0xff]  ;;  %vm185_vm3 = vcmp.lt.s32.totalorder %v1386_v7, 3  ;;  %p1237_p0 = scmp.lt.s32.totalorder %s1532_s7, %s1235_s13  ;;  %p1238_p1 = scmp.lt.s32.totalorder %s1236_s18, %s1230_s0 }
  0x1a   : > { %1118 = vmatpush3.msra.mxu1 %v196_v4  ;;  %1108 = vmatprep.subr.mxu0 %v1016_v5  ;;  %v385_v15 = vadd.s32 4294967295, %v1386_v7  ;;  %v206_v16 = vrot.slane %v1403_v13, 6  ;;  %v207_v17 = vrot.slane %v1405_v14, 6  ;;  %v183_v18 = vrot.slane %v1403_v13, 5  ;;  %v1024_v32 = vld [vmem:[%s1575_s1 + $0x48] sm:$0xff]  ;;  %v1023_v35 = vld [vmem:[%s1575_s1 + $0x40] sm:$0xff]  ;;  %p1232_p12 = pnand %p1231_p11, %p1356_p5 }
  0x1b   : > { %1119 = vmatprep.subr.mxu1 %v195_v6  ;;  %1109 = vmatpush3.msra.mxu0 %v1016_v5  ;;  %vm200_vm1 = vcmp.ge.s32.totalorder %v198_v10, 0  ;;  %vm177_vm2 = vcmp.ge.s32.totalorder %v175_v11, 0  ;;  %v184_v19 = vrot.slane %v1405_v14, 5  ;;  %v393_v21 = vrot.slane %v1403_v13, 7  ;;  %v1030_v33 = vld [vmem:[%s1575_s1 + $0x68] sm:$0xff]  ;;  %v1029_v37 = vld [vmem:[%s1575_s1 + $0x60] sm:$0xff]  ;;  %p1239_p2 = por %p1238_p1, %p1237_p0 }
  0x1c   : > { %1120 = vmatpush3.msra.mxu1 %v195_v6  ;;  %1110 = vmatprep.subr.mxu0 %v1015_v8  ;;  %v394_v22 = vrot.slane %v1405_v14, 7  ;;  %vm395_vm5 = vcmp.lt.s32.totalorder %v1386_v7, 1  ;;  %v210_v23 = vsel %vm208_vm0, %v207_v17, %v206_v16  ;;  %v209_v25 = vsel %vm208_vm0, %v206_v16, %v207_v17  ;;  %v1038_v39 = vld [vmem:[%s1575_s1 + $0x98] sm:$0xff]  ;;  %v1037_v43 = vld [vmem:[%s1575_s1 + $0x90] sm:$0xff]  ;;  %v1036_v45 = vld [vmem:[%s1575_s1 + $0x88] sm:$0xff]  ;;  %p1233_p13 = pneg %p1232_p12 }
  0x1d   : > { %1121 = vmatprep.subr.mxu1 %v194_v9  ;;  %1111 = vmatpush3.msra.mxu0 %v1015_v8  ;;  %v187_v24 = vsel %vm185_vm3, %v184_v19, %v183_v18  ;;  %v186_v26 = vsel %vm185_vm3, %v183_v18, %v184_v19  ;;  %v215_v27 = vsel %vm200_vm1, %v210_v23, 0.0  ;;  %vm387_vm6 = vcmp.ge.s32.totalorder %v385_v15, 0  ;;  %v1044_v44 = vld [vmem:[%s1575_s1 + $0xb8] sm:$0xff]  ;;  %v1043_v46 = vld [vmem:[%s1575_s1 + $0xb0] sm:$0xff]  ;;  %v1035_v51 = vld [vmem:[%s1575_s1 + $0x80] sm:$0xff] }
  0x1e   : > { %1122 = vmatpush3.msra.mxu1 %v194_v9  ;;  %1126 = vmatprep.subr.mxu0 %v1026_v12  ;;  %v192_v28 = vsel %vm177_vm2, %v187_v24, 0.0  ;;  %v397_v31 = vsel %vm395_vm5, %v394_v22, %v393_v21  ;;  %v174_v36 = vadd.s32 8, %v1386_v7  ;;  %v396_v38 = vsel %vm395_vm5, %v393_v21, %v394_v22  ;;  %v1042_v52 = vld [vmem:[%s1575_s1 + $0xa8] sm:$0xff]  ;;  %v1041_v58 = vld [vmem:[%s1575_s1 + $0xa0] sm:$0xff]  ;;  %v1050_v59 = vld [vmem:[%s1575_s1 + $0xd8] sm:$0xff]  ;;  %p1240_p3 = pnand %p1239_p2, %p1233_p13 }
  0x1f   : > { %1137 = vmatprep.subr.mxu1 %v1032_v20  ;;  %1112 = vmatprep.mubr.msk.f32.mxu0 %vm222_vm4, %v215_v27  ;;  %v402_v34 = vsel %vm387_vm6, %v397_v31, 0.0  ;;  %v600_v40 = vrot.slane %v1403_v13, 1  ;;  %v601_v41 = vrot.slane %v1405_v14, 1  ;;  %vm602_vm7 = vcmp.lt.s32.totalorder %v1386_v7, 7  ;;  %v1049_v63 = vld [vmem:[%s1575_s1 + $0xd0] sm:$0xff]  ;;  %v1048_v1 = vld [vmem:[%s1575_s1 + $0xc8] sm:$0xff] }
  0x20   : > { %1123 = vmatprep.mubr.msk.f32.mxu1 %vm222_vm4, %v192_v28  ;;  %1113 = vmatmul.mubr.msk.f32.vlgmr.msra.gmra.mxu0 %vm222_vm4, %v209_v25  ;;  %v593_v42 = vadd.s32 1, %v174_v36  ;;  %v707_v47 = vrot.slane %v1403_v13, 2  ;;  %v708_v48 = vrot.slane %v1405_v14, 2  ;;  %v700_v49 = vadd.s32 2, %v174_v36  ;;  %v1047_v3 = vld [vmem:[%s1575_s1 + $0xc0] sm:$0xff] }
  0x21   : > { %1124 = vmatmul.mubr.msk.f32.vlgmr.msra.gmra.mxu1 %vm222_vm4, %v186_v26  ;;  %1127 = vmatpush3.msra.mxu0 %v1026_v12  ;;  %v604_v50 = vsel %vm602_vm7, %v601_v41, %v600_v40  ;;  %vm709_vm9 = vcmp.lt.s32.totalorder %v1386_v7, 6  ;;  %v603_v53 = vsel %vm602_vm7, %v600_v40, %v601_v41  ;;  %v814_v54 = vrot.slane %v1403_v13, 3 }
  0x22   : > { %1138 = vmatpush3.msra.mxu1 %v1032_v20  ;;  %1128 = vmatprep.subr.mxu0 %v1025_v29  ;;  %vm597_vm8 = vcmp.lt.s32.totalorder %v593_v42, 16  ;;  %vm704_vm10 = vcmp.lt.s32.totalorder %v700_v49, 16  ;;  %v711_v56 = vsel %vm709_vm9, %v708_v48, %v707_v47  ;;  %v815_v57 = vrot.slane %v1405_v14, 3 }
  0x23   : > { %1139 = vmatprep.subr.mxu1 %v1031_v30  ;;  %1129 = vmatpush3.msra.mxu0 %v1025_v29  ;;  %v610_v55 = vsel %vm597_vm8, %v604_v50, 0.0  ;;  %vm816_vm11 = vcmp.lt.s32.totalorder %v1386_v7, 5  ;;  %v710_v60 = vsel %vm709_vm9, %v707_v47, %v708_v48  ;;  %v717_v61 = vsel %vm704_vm10, %v711_v56, 0.0 }
  0x24   : > { %1140 = vmatpush3.msra.mxu1 %v1031_v30  ;;  %1130 = vmatprep.subr.mxu0 %v1024_v32  ;;  %v807_v62 = vadd.s32 3, %v174_v36  ;;  %v817_v0 = vsel %vm816_vm11, %v814_v54, %v815_v57  ;;  %v818_v2 = vsel %vm816_vm11, %v815_v57, %v814_v54  ;;  %v914_v27 = vstv %s913_s29 }
  0x25   : > { %1141 = vmatprep.subr.mxu1 %v1030_v33  ;;  %1131 = vmatpush3.msra.mxu0 %v1024_v32 }
  0x26   : > { %1134 = vmatprep.mubr.msk.f32.mxu0 %vm222_vm4, %v402_v34  ;;  %1132 = vmatprep.subr.mxu0 %v1023_v35  ;;  %vm811_vm12 = vcmp.lt.s32.totalorder %v807_v62, 16 }
  0x27   : > { %1142 = vmatpush3.msra.mxu1 %v1030_v33  ;;  %1133 = vmatpush3.msra.mxu0 %v1023_v35  ;;  %v824_v4 = vsel %vm811_vm12, %v818_v2, 0.0 }
  0x28   : > { %1143 = vmatprep.subr.mxu1 %v1029_v37  ;;  %1135 = vmatmul.mubr.msk.f32.vlgmr.msra.gmra.mxu0 %vm222_vm4, %v396_v38 }
  0x29   : > { %1148 = vmatprep.subr.mxu0 %v1038_v39  ;;  %1144 = vmatpush3.msra.mxu1 %v1029_v37 }
  0x2a   : > { %1145 = vmatprep.mubr.msk.f32.mxu1 %vm222_vm4, %v1403_v13  ;;  %1149 = vmatpush3.msra.mxu0 %v1038_v39 }
  0x2b   : > { %1146 = vmatmul.mubr.msk.f32.vlgmr.msra.gmra.mxu1 %vm222_vm4, %v1405_v14  ;;  %1150 = vmatprep.subr.mxu0 %v1037_v43 }
  0x2c   : > { %1159 = vmatprep.subr.mxu1 %v1044_v44  ;;  %1151 = vmatpush3.msra.mxu0 %v1037_v43 }
  0x2d   : > { %1160 = vmatpush3.msra.mxu1 %v1044_v44  ;;  %1152 = vmatprep.subr.mxu0 %v1036_v45 }
  0x2e   : > { %1161 = vmatprep.subr.mxu1 %v1043_v46  ;;  %1153 = vmatpush3.msra.mxu0 %v1036_v45 }
  0x2f   : > { %1162 = vmatpush3.msra.mxu1 %v1043_v46  ;;  %1154 = vmatprep.subr.mxu0 %v1035_v51 }
  0x30   : > { %1163 = vmatprep.subr.mxu1 %v1042_v52  ;;  %1155 = vmatpush3.msra.mxu0 %v1035_v51 }
  0x31   : > { %1156 = vmatprep.mubr.msk.f32.mxu0 %vm222_vm4, %v603_v53  ;;  %1164 = vmatpush3.msra.mxu1 %v1042_v52 }
  0x32   : > { %1157 = vmatmul.mubr.msk.f32.vlgmr.msra.gmra.mxu0 %vm222_vm4, %v610_v55  ;;  %1165 = vmatprep.subr.mxu1 %v1041_v58 }
  0x33   : > { %1170 = vmatprep.subr.mxu0 %v1050_v59  ;;  %1166 = vmatpush3.msra.mxu1 %v1041_v58 }
  0x34   : > { %1167 = vmatprep.mubr.msk.f32.mxu1 %vm222_vm4, %v710_v60  ;;  %1171 = vmatpush3.msra.mxu0 %v1050_v59 }
  0x35   : > { %1168 = vmatmul.mubr.msk.f32.vlgmr.msra.gmra.mxu1 %vm222_vm4, %v717_v61  ;;  %1172 = vmatprep.subr.mxu0 %v1049_v63 }
  0x36   : > { %1178 = vmatprep.mubr.msk.f32.mxu0 %vm222_vm4, %v817_v0  ;;  %1173 = vmatpush3.msra.mxu0 %v1049_v63 }
  0x37   : > { %1174 = vmatprep.subr.mxu0 %v1048_v1 }
  0x38   : > { %1175 = vmatpush3.msra.mxu0 %v1048_v1 }
  0x39   : > { %1176 = vmatprep.subr.mxu0 %v1047_v3 }
  0x3a   : > { %1177 = vmatpush3.msra.mxu0 %v1047_v3 }
  0x3b   : > { %1179 = vmatmul.mubr.msk.f32.vlgmr.msra.gmra.mxu0 %vm222_vm4, %v824_v4 }
  0xe0   : > { %v1114_v5 = vpop.f32.mrf.mxu0 }
  0xe1   : > { %v1125_v6 = vpop.f32.mrf.mxu1 }
  0xe2   : > { %v295_v8 = vpop.f32.mrf.mxu0  ;;  %v382_v11 = vadd.f32 %v1125_v6, %v1114_v5 }
  0xe3   : > { %v376_v10 = vpop.f32.mrf.mxu1 }
  0xe4   : > { %v377_v13 = vadd.f32 %v376_v10, %v295_v8 }
  0xe8   : > { %v1136_v9 = vpop.f32.mrf.mxu0 }
  0xe9   : > { %v491_v14 = vadd.f32 %v1136_v9, %v382_v11 }
  0xea   : > { %v481_v7 = vpop.f32.mrf.mxu0 }
  0xeb   : > { %v1147_v12 = vpop.f32.mrf.mxu1  ;;  %v490_v16 = vadd.f32 %v481_v7, %v377_v13 }
  0xec   : > { %v591_v18 = vadd.f32 %v1147_v12, %v491_v14 }
  0xed   : > { %v581_v17 = vpop.f32.mrf.mxu1 }
  0xee   : > { %v590_v21 = vadd.f32 %v581_v17, %v490_v16 }
  0xf2   : > { %v1158_v15 = vpop.f32.mrf.mxu0 }
  0xf3   : > { %v698_v22 = vadd.f32 %v1158_v15, %v591_v18 }
  0xf4   : > { %v688_v19 = vpop.f32.mrf.mxu0 }
  0xf5   : > { %v1169_v20 = vpop.f32.mrf.mxu1  ;;  %v697_v23 = vadd.f32 %v688_v19, %v590_v21 }
  0xf6   : > { %v805_v25 = vadd.f32 %v1169_v20, %v698_v22 }
  0xf7   : > { %v795_v24 = vpop.f32.mrf.mxu1 }
  0xf8   : > { %v804_v28 = vadd.f32 %v795_v24, %v697_v23 }
  0xfb   : > { %v1180_v26 = vpop.f32.mrf.mxu0 }
  0xfc   : > { %v912_v29 = vadd.f32 %v1180_v26, %v805_v25 }
  0xfd   : > { %v902_v30 = vpop.f32.mrf.mxu0 }
  0xfe   : > { %v916_v31 = vadd.f32 %v914_v27, %v912_v29  ;;  %v911_v32 = vadd.f32 %v902_v30, %v804_v28 }
 0x100   : > { %v1054_v33 = vmul.f32 -1.442695, %v916_v31  ;;  %v915_v34 = vadd.f32 %v914_v27, %v911_v32 }
 0x102   : > { %1222 = vpow2.f32 %v1054_v33  ;;  %v1053_v35 = vmul.f32 -1.442695, %v915_v34 }
 0x104   : > { %1224 = vpow2.f32 %v1053_v35 }
 0x10f   : > { %v1223_v36 = vpop.eup %1222 }
 0x110   : > { %v924_v37 = vadd.f32 1.0, %v1223_v36 }
 0x111   : > { %v1225_v38 = vpop.eup %1224 }
 0x112   : > { %1226 = vrcp.f32 %v924_v37  ;;  %v923_v39 = vadd.f32 1.0, %v1225_v38 }
 0x114   : > { %1228 = vrcp.f32 %v923_v39 }
 0x11f   : > { %v1227_v40 = vpop.eup %1226 }
 0x120   : > { %931 = vst.msk [vmem:[%s164_s6 + $0x8] sm:$0xff] %vm929_vm13, %v1227_v40 }
 0x121   : > { %v1229_v41 = vpop.eup %1228 }
 0x122   : > { %930 = vst.msk [vmem:[%s164_s6] sm:$0xff] %vm929_vm13, %v1229_v41 }
 0x123   : > { %1243 = shalt.err (!%p1240_p3)
}
 0x124   : > { %s1244_s20 = scalar_lea.hbm %s1530_s10, 256  ;;  %s1248_s26 = scalar_lea.hbm %s1577_s3, 512 }
 0x125   : > { %p1245_p4 = scmp.ne.s32.totalorder %s1530_s10, %s1244_s20  ;;  %p1249_p9 = scmp.lt.s32.totalorder %s1530_s10, %s1577_s3 }
 0x126   : > { %p1250_p10 = scmp.lt.s32.totalorder %s1248_s26, %s1244_s20 }
 0x127   : > { %p1246_p7 = pnand %p1245_p4, %p1356_p5 }
 0x128   : > { %p1251_p11 = por %p1250_p10, %p1249_p9 }
 0x129   : > { %p1247_p8 = pneg %p1246_p7 }
 0x12b   : > { %p1252_p12 = pnand %p1251_p11, %p1247_p8 }
 0x12d   : > { %1255 = shalt.err (!%p1252_p12)
}
 0x12e   : > { %s1293_s29 = smov 128   ;;  %s1294_s30 = smov 8  }
 0x12f   : > { %1181 = dma.vmem_to_hbm [thread:$0]  (%p1356_p5), %s1532_s7, 256, %s1530_s10, %s1534_s11, %s1293_s29, %s1293_s29, %s1294_s30  }
 0x130 PF: > { %p1187_p13 = scmp.ge.s32.totalorder %s1290_s17, 2  ;;  %s961_s4 = sand.u32 1, %s1278_s14  }
 0x131   : > { %s962_s5 = scalar_lea.sflag [#allocation4], %s961_s4 }
 0x132   : > { %p1184_p0 = pnand %p1187_p13, %p1360_p6 }
 0x134   : > { %p1185_p1 = pneg %p1184_p0 }
 0x136   : > { %1273 = dma.done.wait (%p1185_p1), %s962_s5, 256  }
 0x137   : > { %1275 = vsyncadd (%p1185_p1), %s962_s5, 4294967040  ;;  %p14_p2 = scmp.ge.s32.totalorder %s1343_s19, 4   ;;  %s1580_s14 = smov %s1282_s15 }
 0x138   : > { %s1581_s15 = smov %s1286_s16  ;;  %s1582_s16 = smov %s1354_s22 }
 0x139   : > { %s1583_s17 = smov %s1343_s19  ;;  %16 = sbr.rel (!%p14_p2) target bundleno = 5 (0x5), region = 73 }
 0x13e   :  { %967 = vsyncpa [#allocation4], 1 }
 0x13f   :  { %969 = vsyncpa [#allocation4 + $0x1], 1 }

</bundles_post_ra>
